<compile_context>
chip_gen: v5e
topology: v5e:2x2
jax: 0.10.0
libtpu: 0.0.40
codegen_flags: <defaults>
</compile_context>

<pallas_src>
import jax
import jax.numpy as jnp
from jax.experimental import pallas as pl
from jax.experimental.pallas import tpu as pltpu

SCALE = 2048 ** (-0.5)   # fixed constant in the PyTorch module, independent of dim
LN_EPS = 1e-5            # torch.nn.LayerNorm default eps


def _layernorm_f32(v):
    """LayerNorm over the last axis (no affine), numerically safe two-pass form."""
    mu = jnp.mean(v, axis=-1, keepdims=True)
    d = v - mu
    var = jnp.mean(d * d, axis=-1, keepdims=True)
    return d * jax.lax.rsqrt(var + LN_EPS)


def _dot_nt(a, b):
    """a @ b^T via dot_general contracting the last dims (NT form, f32 accumulation).

    Feeds the MXU directly; avoids the XLU transpose + VMEM copy `.T` would cost.
    """
    return jax.lax.dot_general(
        a, b, (((1,), (1,)), ((), ())), preferred_element_type=jnp.float32)


# ---------------------------------------------------------------------------
# Pass 1: per-token pre-projection (runs once per token, not per (q,k) pair).
# ---------------------------------------------------------------------------
def _preproject_kernel(x_ref, g_ref, xmean_ref, wq_ref, wg_ref,
                       relq_ref, gn_ref, relg_ref):
    cd = wq_ref.dtype                                   # MXU compute dtype

    xf = x_ref[...].astype(jnp.float32)                 # (ts, D)
    qn = _layernorm_f32(xf).astype(cd)
    relq_ref[...] = _dot_nt(qn, wq_ref[...]).astype(cd)   # SCALE already folded into Wq

    gc = g_ref[...].astype(jnp.float32) - xmean_ref[...].astype(jnp.float32)
    gn_c = _layernorm_f32(gc).astype(cd)
    gn_ref[...] = gn_c
    relg_ref[...] = _dot_nt(gn_c, wg_ref[...]).astype(cd)


# ---------------------------------------------------------------------------
# Pass 2: flash-style attention with online softmax.
# ---------------------------------------------------------------------------
def _deltaor_attn_kernel(x_ref, relq_ref, gn_ref, relg_ref, out_ref,
                         m_ref, l_ref, acc_ref):
    kj = pl.program_id(2)

    @pl.when(kj == 0)
    def _init():
        m_ref[...] = jnp.full(m_ref.shape, -jnp.inf, dtype=jnp.float32)
        l_ref[...] = jnp.zeros(l_ref.shape, dtype=jnp.float32)
        acc_ref[...] = jnp.zeros(acc_ref.shape, dtype=jnp.float32)

    # Scores for this (q-tile, k-tile); scale is folded into rel_q via Wq.
    s = _dot_nt(relq_ref[...], relg_ref[...])            # (tq, tk) f32

    m_prev = m_ref[...]
    m_new = jnp.maximum(m_prev, jnp.max(s, axis=-1, keepdims=True))
    alpha = jnp.exp(m_prev - m_new)
    p = jnp.exp(s - m_new)
    l_ref[...] = alpha * l_ref[...] + jnp.sum(p, axis=-1, keepdims=True)
    acc_ref[...] = alpha * acc_ref[...] + jnp.dot(
        p.astype(gn_ref.dtype), gn_ref[...], preferred_element_type=jnp.float32)
    m_ref[...] = m_new

    @pl.when(kj == pl.num_programs(2) - 1)
    def _finalize():
        inv_l = 1.0 / l_ref[...]                         # exact; only (tq, 1) divides
        out = x_ref[...].astype(jnp.float32) + acc_ref[...] * inv_l
        out_ref[...] = out.astype(out_ref.dtype)


# ---------------------------------------------------------------------------
# Wrapper
# ---------------------------------------------------------------------------
def _pick_tile(n, cap, prefer_even_count=False):
    """Largest seq tile <= cap that divides n with an 8-aligned sublane dim.

    Falls back to the full extent (always a legal block) if no such divisor
    exists.  With prefer_even_count=True, prefer tiles giving an even tile
    count (keeps both v7x TensorCores busy when batch is odd)."""
    if n <= cap:
        return n
    candidates = [t for t in range(min(cap, n), 0, -1) if n % t == 0 and t % 8 == 0]
    if not candidates:
        return n
    if prefer_even_count:
        for t in candidates:
            if (n // t) % 2 == 0:
                return t
    return candidates[0]


def _vmem_limit(working_set_bytes):
    # Explicit scoped-VMEM cap sized from the actual working set plus headroom
    # for Mosaic internal scratch; defaults are only 16 MiB (v5e) / 32 MiB (v6e/v7x).
    return int(max(working_set_bytes + (8 << 20), 32 << 20))


def deltaor_forward(x, g, wq, wg, *, compute_dtype=jnp.bfloat16,
                    block_q=256, block_k=256, block_pre=256):
    B, N, D = x.shape
    x_bytes = jnp.dtype(x.dtype).itemsize
    cd_bytes = jnp.dtype(compute_dtype).itemsize

    prefer_even = (B % 2 == 1)          # v7x megacore: keep B*nq even
    tq = _pick_tile(N, block_q, prefer_even_count=prefer_even)
    tk = _pick_tile(N, block_k)
    ts = _pick_tile(N, block_pre)
    nq, nk, ns = N // tq, N // tk, N // ts

    # Wrapper-side prep (done once):
    #   - sequence mean of x for centering g,
    #   - weights pre-cast to the MXU compute dtype, softmax SCALE folded into Wq.
    xmean = jnp.mean(x.astype(jnp.float32), axis=1, keepdims=True)     # (B, 1, D)
    wq_c = (wq.astype(jnp.float32) * SCALE).astype(compute_dtype)
    wg_c = wg.astype(compute_dtype)

    # ---- Pass 1: pre-projection ------------------------------------------
    pre_vmem = (2 * 2 * ts * D * x_bytes          # x, g tiles (double-buffered)
                + 2 * D * 4                        # xmean
                + 2 * D * D * cd_bytes             # Wq, Wg (single-buffered)
                + 3 * 2 * ts * D * cd_bytes)       # rel_q, gn, rel_g outputs
    rel_q, gn, rel_g = pl.pallas_call(
        _preproject_kernel,
        out_shape=tuple(jax.ShapeDtypeStruct((B, N, D), compute_dtype)
                        for _ in range(3)),
        grid_spec=pltpu.PrefetchScalarGridSpec(
            num_scalar_prefetch=0,
            grid=(B, ns),
            in_specs=[
                pl.BlockSpec((pl.Squeezed(), ts, D), lambda b, i: (b, i, 0)),  # x
                pl.BlockSpec((pl.Squeezed(), ts, D), lambda b, i: (b, i, 0)),  # g
                pl.BlockSpec((pl.Squeezed(), 1, D), lambda b, i: (b, 0, 0)),   # mean(x, seq)
                # Constant-index weights: single-buffer (no pipelining benefit,
                # halves their VMEM footprint).
                pl.BlockSpec((D, D), lambda b, i: (0, 0),
                             pipeline_mode=pl.Buffered(buffer_count=1)),       # SCALE*Wq
                pl.BlockSpec((D, D), lambda b, i: (0, 0),
                             pipeline_mode=pl.Buffered(buffer_count=1)),       # Wg
            ],
            out_specs=(
                pl.BlockSpec((pl.Squeezed(), ts, D), lambda b, i: (b, i, 0)),  # rel_q
                pl.BlockSpec((pl.Squeezed(), ts, D), lambda b, i: (b, i, 0)),  # gn
                pl.BlockSpec((pl.Squeezed(), ts, D), lambda b, i: (b, i, 0)),  # rel_g
            ),
        ),
        compiler_params=pltpu.CompilerParams(
            dimension_semantics=("parallel", "parallel"),
            vmem_limit_bytes=_vmem_limit(pre_vmem)),
    )(x, g, xmean, wq_c, wg_c)

    # ---- Pass 2: flash attention -------------------------------------------
    attn_vmem = (2 * tq * D * x_bytes              # x (residual)
                 + 2 * tq * D * cd_bytes           # rel_q
                 + 2 * tk * D * cd_bytes           # gn
                 + 2 * tk * D * cd_bytes           # rel_g
                 + 2 * tq * D * x_bytes            # output
                 + tq * D * 4 + 2 * tq * 4)        # f32 accumulator + m/l scratch
    out = pl.pallas_call(
        _deltaor_attn_kernel,
        out_shape=jax.ShapeDtypeStruct((B, N, D), x.dtype),
        grid_spec=pltpu.PrefetchScalarGridSpec(
            num_scalar_prefetch=0,
            grid=(B, nq, nk),
            in_specs=[
                pl.BlockSpec((pl.Squeezed(), tq, D), lambda b, i, j: (b, i, 0)),  # x
                pl.BlockSpec((pl.Squeezed(), tq, D), lambda b, i, j: (b, i, 0)),  # rel_q
                pl.BlockSpec((pl.Squeezed(), tk, D), lambda b, i, j: (b, j, 0)),  # gn
                pl.BlockSpec((pl.Squeezed(), tk, D), lambda b, i, j: (b, j, 0)),  # rel_g
            ],
            out_specs=pl.BlockSpec((pl.Squeezed(), tq, D), lambda b, i, j: (b, i, 0)),
            scratch_shapes=[
                pltpu.VMEM((tq, 1), jnp.float32),   # running max
                pltpu.VMEM((tq, 1), jnp.float32),   # running denom
                pltpu.VMEM((tq, D), jnp.float32),   # f32 output accumulator
            ],
        ),
        compiler_params=pltpu.CompilerParams(
            # batch + query tiles shard across TensorCores; key-tile axis is the
            # online-softmax reduction -> arbitrary, last.
            dimension_semantics=("parallel", "parallel", "arbitrary"),
            vmem_limit_bytes=_vmem_limit(attn_vmem)),
    )(x, rel_q, gn, rel_g)
    return out


def deltaor_reference(x, g, wq, wg):
    # Pure-JAX f32 reference matching the PyTorch module.
    xf, gf = x.astype(jnp.float32), g.astype(jnp.float32)
    qn = _layernorm_f32(xf)
    rel_q = qn @ wq.astype(jnp.float32).T
    gc = gf - jnp.mean(xf, axis=1, keepdims=True)
    gn = _layernorm_f32(gc)
    rel_g = gn @ wg.astype(jnp.float32).T
    rel = jnp.einsum("bnd,bmd->bnm", rel_q, rel_g) * SCALE
    rel = jax.nn.softmax(rel, axis=-1)
    return xf + jnp.einsum("bnm,bmd->bnd", rel, gn)


if __name__ == "__main__":
    B, N, D = 2, 16, 32
    key = jax.random.PRNGKey(0)
    kx, kg, kwq, kwg = jax.random.split(key, 4)

    x = jax.random.normal(kx, (B, N, D), dtype=jnp.float32)
    g = jax.random.normal(kg, (B, N, D), dtype=jnp.float32)
    # Deterministic Linear weights, shape (out_dim, in_dim) as in torch.
    bound = 1.0 / (D ** 0.5)
    wq = jax.random.uniform(kwq, (D, D), minval=-bound, maxval=bound, dtype=jnp.float32)
    wg = jax.random.uniform(kwg, (D, D), minval=-bound, maxval=bound, dtype=jnp.float32)

    ref = deltaor_reference(x, g, wq, wg)

    # f32 operands with small tiles -> exercises the multi-tile online-softmax path.
    out_f32 = deltaor_forward(x, g, wq, wg, compute_dtype=jnp.float32,
                              block_q=8, block_k=8, block_pre=8)
    jax.block_until_ready(out_f32)
    assert jnp.allclose(out_f32, ref, atol=5e-3, rtol=5e-3), "f32 mismatch vs reference"

    # Default optimized path: bf16 MXU operands / streamed tiles, f32 accumulation.
    out_bf16 = deltaor_forward(x, g, wq, wg)
    jax.block_until_ready(out_bf16)
    assert jnp.allclose(out_bf16, ref, atol=5e-2, rtol=5e-2), "bf16 mismatch vs reference"

    print("KERNEL_OK")
</pallas_src>

<mosaic_0001>
module attributes {stable_mosaic.version = 11 : i64} {
  func.func @_preproject_kernel(%arg0: i32, %arg1: i32, %arg2: memref<1x8x32xf32, #tpu.memory_space<vmem>>, %arg3: memref<1x8x32xf32, #tpu.memory_space<vmem>>, %arg4: memref<1x1x32xf32, #tpu.memory_space<vmem>>, %arg5: memref<32x32xf32, #tpu.memory_space<vmem>>, %arg6: memref<32x32xf32, #tpu.memory_space<vmem>>, %arg7: memref<1x8x32xf32, #tpu.memory_space<vmem>>, %arg8: memref<1x8x32xf32, #tpu.memory_space<vmem>>, %arg9: memref<1x8x32xf32, #tpu.memory_space<vmem>>) attributes {dimension_semantics = [#tpu.dimension_semantics<parallel>, #tpu.dimension_semantics<parallel>], iteration_bounds = array<i64: 2, 2>, scalar_prefetch = 0 : i64, scratch_operands = 0 : i64, tpu.core_type = #tpu.core_type<tc>, window_params = [{transform_indices = @transform_0, window_bounds = array<i64: 1, 8, 32>}, {transform_indices = @transform_1, window_bounds = array<i64: 1, 8, 32>}, {transform_indices = @transform_2, window_bounds = array<i64: 1, 1, 32>}, {pipeline_mode = #tpu.pipeline_mode<synchronous>, transform_indices = @transform_3, window_bounds = array<i64: 32, 32>}, {pipeline_mode = #tpu.pipeline_mode<synchronous>, transform_indices = @transform_4, window_bounds = array<i64: 32, 32>}, {transform_indices = @transform_5, window_bounds = array<i64: 1, 8, 32>}, {transform_indices = @transform_6, window_bounds = array<i64: 1, 8, 32>}, {transform_indices = @transform_7, window_bounds = array<i64: 1, 8, 32>}]} {
    %c0 = arith.constant 0 : index
    %c0_0 = arith.constant 0 : index
    %c0_1 = arith.constant 0 : index
    %0 = vector.load %arg2[%c0, %c0_0, %c0_1] : memref<1x8x32xf32, #tpu.memory_space<vmem>>, vector<1x8x32xf32>
    %1 = vector.shape_cast %0 : vector<1x8x32xf32> to vector<8x32xf32>
    %cst = arith.constant dense<0.000000e+00> : vector<8xf32>
    %2 = vector.multi_reduction <add>, %1, %cst [1] : vector<8x32xf32> to vector<8xf32>
    %3 = vector.shape_cast %2 : vector<8xf32> to vector<8x1xf32>
    %cst_2 = arith.constant 3.200000e+01 : f32
    %4 = vector.broadcast %cst_2 : f32 to vector<8x1xf32>
    %5 = arith.divf %3, %4 : vector<8x1xf32>
    %6 = vector.broadcast %5 : vector<8x1xf32> to vector<8x32xf32>
    %7 = arith.subf %1, %6 : vector<8x32xf32>
    %8 = arith.mulf %7, %7 : vector<8x32xf32>
    %cst_3 = arith.constant dense<0.000000e+00> : vector<8xf32>
    %9 = vector.multi_reduction <add>, %8, %cst_3 [1] : vector<8x32xf32> to vector<8xf32>
    %10 = vector.shape_cast %9 : vector<8xf32> to vector<8x1xf32>
    %cst_4 = arith.constant 3.200000e+01 : f32
    %11 = vector.broadcast %cst_4 : f32 to vector<8x1xf32>
    %12 = arith.divf %10, %11 : vector<8x1xf32>
    %cst_5 = arith.constant 9.99999974E-6 : f32
    %13 = vector.broadcast %cst_5 : f32 to vector<8x1xf32>
    %14 = arith.addf %12, %13 : vector<8x1xf32>
    %15 = math.rsqrt %14 : vector<8x1xf32>
    %16 = vector.broadcast %15 : vector<8x1xf32> to vector<8x32xf32>
    %17 = arith.mulf %7, %16 : vector<8x32xf32>
    %c0_6 = arith.constant 0 : index
    %c0_7 = arith.constant 0 : index
    %18 = vector.load %arg5[%c0_6, %c0_7] : memref<32x32xf32, #tpu.memory_space<vmem>>, vector<32x32xf32>
    %cst_8 = arith.constant dense<0.000000e+00> : vector<8x32xf32>
    %19 = tpu.matmul %17, %18, %cst_8 {dimension_numbers = #tpu.dot_dimension_numbers<[1], [1], [0], [0], [0, 0, 1, 0], [], []>} : vector<8x32xf32>, vector<32x32xf32>, vector<8x32xf32> -> vector<8x32xf32>
    %c0_9 = arith.constant 0 : index
    %c0_10 = arith.constant 0 : index
    %c0_11 = arith.constant 0 : index
    %20 = vector.load %arg7[%c0_9, %c0_10, %c0_11] : memref<1x8x32xf32, #tpu.memory_space<vmem>>, vector<1x8x32xf32>
    %21 = vector.shape_cast %20 : vector<1x8x32xf32> to vector<8x32xf32>
    %22 = vector.shape_cast %19 : vector<8x32xf32> to vector<1x8x32xf32>
    tpu.vector_store %arg7[%c0_9, %c0_10, %c0_11], %22 {strides = array<i32>} : memref<1x8x32xf32, #tpu.memory_space<vmem>>, vector<1x8x32xf32>,
    %c0_12 = arith.constant 0 : index
    %c0_13 = arith.constant 0 : index
    %c0_14 = arith.constant 0 : index
    %23 = vector.load %arg3[%c0_12, %c0_13, %c0_14] : memref<1x8x32xf32, #tpu.memory_space<vmem>>, vector<1x8x32xf32>
    %24 = vector.shape_cast %23 : vector<1x8x32xf32> to vector<8x32xf32>
    %c0_15 = arith.constant 0 : index
    %c0_16 = arith.constant 0 : index
    %c0_17 = arith.constant 0 : index
    %25 = vector.load %arg4[%c0_15, %c0_16, %c0_17] : memref<1x1x32xf32, #tpu.memory_space<vmem>>, vector<1x1x32xf32>
    %26 = vector.shape_cast %25 : vector<1x1x32xf32> to vector<1x32xf32>
    %27 = vector.broadcast %26 : vector<1x32xf32> to vector<8x32xf32>
    %28 = arith.subf %24, %27 : vector<8x32xf32>
    %cst_18 = arith.constant dense<0.000000e+00> : vector<8xf32>
    %29 = vector.multi_reduction <add>, %28, %cst_18 [1] : vector<8x32xf32> to vector<8xf32>
    %30 = vector.shape_cast %29 : vector<8xf32> to vector<8x1xf32>
    %cst_19 = arith.constant 3.200000e+01 : f32
    %31 = vector.broadcast %cst_19 : f32 to vector<8x1xf32>
    %32 = arith.divf %30, %31 : vector<8x1xf32>
    %33 = vector.broadcast %32 : vector<8x1xf32> to vector<8x32xf32>
    %34 = arith.subf %28, %33 : vector<8x32xf32>
    %35 = arith.mulf %34, %34 : vector<8x32xf32>
    %cst_20 = arith.constant dense<0.000000e+00> : vector<8xf32>
    %36 = vector.multi_reduction <add>, %35, %cst_20 [1] : vector<8x32xf32> to vector<8xf32>
    %37 = vector.shape_cast %36 : vector<8xf32> to vector<8x1xf32>
    %cst_21 = arith.constant 3.200000e+01 : f32
    %38 = vector.broadcast %cst_21 : f32 to vector<8x1xf32>
    %39 = arith.divf %37, %38 : vector<8x1xf32>
    %cst_22 = arith.constant 9.99999974E-6 : f32
    %40 = vector.broadcast %cst_22 : f32 to vector<8x1xf32>
    %41 = arith.addf %39, %40 : vector<8x1xf32>
    %42 = math.rsqrt %41 : vector<8x1xf32>
    %43 = vector.broadcast %42 : vector<8x1xf32> to vector<8x32xf32>
    %44 = arith.mulf %34, %43 : vector<8x32xf32>
    %c0_23 = arith.constant 0 : index
    %c0_24 = arith.constant 0 : index
    %c0_25 = arith.constant 0 : index
    %45 = vector.load %arg8[%c0_23, %c0_24, %c0_25] : memref<1x8x32xf32, #tpu.memory_space<vmem>>, vector<1x8x32xf32>
    %46 = vector.shape_cast %45 : vector<1x8x32xf32> to vector<8x32xf32>
    %47 = vector.shape_cast %44 : vector<8x32xf32> to vector<1x8x32xf32>
    tpu.vector_store %arg8[%c0_23, %c0_24, %c0_25], %47 {strides = array<i32>} : memref<1x8x32xf32, #tpu.memory_space<vmem>>, vector<1x8x32xf32>,
    %c0_26 = arith.constant 0 : index
    %c0_27 = arith.constant 0 : index
    %48 = vector.load %arg6[%c0_26, %c0_27] : memref<32x32xf32, #tpu.memory_space<vmem>>, vector<32x32xf32>
    %cst_28 = arith.constant dense<0.000000e+00> : vector<8x32xf32>
    %49 = tpu.matmul %44, %48, %cst_28 {dimension_numbers = #tpu.dot_dimension_numbers<[1], [1], [0], [0], [0, 0, 1, 0], [], []>} : vector<8x32xf32>, vector<32x32xf32>, vector<8x32xf32> -> vector<8x32xf32>
    %c0_29 = arith.constant 0 : index
    %c0_30 = arith.constant 0 : index
    %c0_31 = arith.constant 0 : index
    %50 = vector.load %arg9[%c0_29, %c0_30, %c0_31] : memref<1x8x32xf32, #tpu.memory_space<vmem>>, vector<1x8x32xf32>
    %51 = vector.shape_cast %50 : vector<1x8x32xf32> to vector<8x32xf32>
    %52 = vector.shape_cast %49 : vector<8x32xf32> to vector<1x8x32xf32>
    tpu.vector_store %arg9[%c0_29, %c0_30, %c0_31], %52 {strides = array<i32>} : memref<1x8x32xf32, #tpu.memory_space<vmem>>, vector<1x8x32xf32>,
    return
  }
  func.func @transform_0(%arg0: i32, %arg1: i32) -> (i32, i32, i32) {
    %c0_i32 = arith.constant 0 : i32
    %c0_i32_0 = arith.constant 0 : i32
    return %arg0, %arg1, %c0_i32 : i32, i32, i32
  }
  func.func @transform_1(%arg0: i32, %arg1: i32) -> (i32, i32, i32) {
    %c0_i32 = arith.constant 0 : i32
    %c0_i32_0 = arith.constant 0 : i32
    return %arg0, %arg1, %c0_i32 : i32, i32, i32
  }
  func.func @transform_2(%arg0: i32, %arg1: i32) -> (i32, i32, i32) {
    %c0_i32 = arith.constant 0 : i32
    %c0_i32_0 = arith.constant 0 : i32
    %c0_i32_1 = arith.constant 0 : i32
    return %arg0, %c0_i32, %c0_i32_0 : i32, i32, i32
  }
  func.func @transform_3(%arg0: i32, %arg1: i32) -> (i32, i32) {
    %c0_i32 = arith.constant 0 : i32
    %c0_i32_0 = arith.constant 0 : i32
    %c0_i32_1 = arith.constant 0 : i32
    return %c0_i32, %c0_i32_0 : i32, i32
  }
  func.func @transform_4(%arg0: i32, %arg1: i32) -> (i32, i32) {
    %c0_i32 = arith.constant 0 : i32
    %c0_i32_0 = arith.constant 0 : i32
    %c0_i32_1 = arith.constant 0 : i32
    return %c0_i32, %c0_i32_0 : i32, i32
  }
  func.func @transform_5(%arg0: i32, %arg1: i32) -> (i32, i32, i32) {
    %c0_i32 = arith.constant 0 : i32
    %c0_i32_0 = arith.constant 0 : i32
    return %arg0, %arg1, %c0_i32 : i32, i32, i32
  }
  func.func @transform_6(%arg0: i32, %arg1: i32) -> (i32, i32, i32) {
    %c0_i32 = arith.constant 0 : i32
    %c0_i32_0 = arith.constant 0 : i32
    return %arg0, %arg1, %c0_i32 : i32, i32, i32
  }
  func.func @transform_7(%arg0: i32, %arg1: i32) -> (i32, i32, i32) {
    %c0_i32 = arith.constant 0 : i32
    %c0_i32_0 = arith.constant 0 : i32
    return %arg0, %arg1, %c0_i32 : i32, i32, i32
  }
}

</mosaic_0001>

<bundles_post_ra>
// kernel: tpu_custom_call.1
= control target key start
LH: loop header
LB: loop body
LE: loop exit
PB: predicated region body
PF: predicated region fallthrough
CT: control target
= control target key end

     0   :  { %s1773_s0 = inlined_call_operand.hbm [shape: f32[2,16,32], index: 0, kind: input, shape index: {}]   ;;  %s1774_s1 = inlined_call_operand.hbm [shape: f32[2,16,32], index: 1, kind: input, shape index: {}]   ;;  %s1775_s2 = inlined_call_operand.hbm [shape: f32[2,1,32], index: 2, kind: input, shape index: {}]   ;;  %s1776_s3 = inlined_call_operand.hbm [shape: f32[32,32], index: 3, kind: input, shape index: {}]   ;;  %s1777_s4 = inlined_call_operand.hbm [shape: f32[32,32], index: 4, kind: input, shape index: {}]   ;;  %s1778_s5 = inlined_call_operand.hbm [shape: f32[2,16,32], index: 5, kind: output, shape index: {0}]   ;;  %s1779_s6 = inlined_call_operand.hbm [shape: f32[2,16,32], index: 6, kind: output, shape index: {1}]   ;;  %s1780_s7 = inlined_call_operand.hbm [shape: f32[2,16,32], index: 7, kind: output, shape index: {2}]  }
   0x1   :  { %1797 = sst [smem:[#allocation30_spill]] %s1773_s0 }
   0x2   :  { %1798 = sst [smem:[#allocation31_spill]] %s1774_s1 }
   0x3   :  { %1799 = sst [smem:[#allocation32_spill]] %s1775_s2 }
   0x4   :  { %1800 = sst [smem:[#allocation33_spill]] %s1776_s3 }
   0x5   :  { %1801 = sst [smem:[#allocation34_spill]] %s1777_s4 }
   0x6   :  { %1802 = sst [smem:[#allocation35_spill]] %s1778_s5 }
   0x7   :  { %1803 = sst [smem:[#allocation36_spill]] %s1779_s6 }
   0x8   :  { %1804 = sst [smem:[#allocation37_spill]] %s1780_s7 }
   0x9   :  { %13 = vsyncpa [#allocation3], 0 }
   0xa   :  { %15 = vsyncpa [#allocation3 + $0x1], 0 }
   0xb   :  { %16 = vsyncpa [#allocation6], 0 }
   0xc   :  { %18 = vsyncpa [#allocation6 + $0x1], 0 }
   0xd   :  { %19 = vsyncpa [#allocation9], 0 }
   0xe   :  { %20 = vsyncpa [#allocation4], 0 }
   0xf   :  { %22 = vsyncpa [#allocation4 + $0x1], 0 }
  0x10   :  { %23 = vsyncpa [#allocation13], 0 }
  0x11   :  { %25 = vsyncpa [#allocation13 + $0x1], 0  ;;  %s1441_s24 = smov 0   ;;  %s1443_s25 = smov 0  }
  0x12   :  { %s1445_s26 = smov 0   ;;  %s1447_s27 = smov 0  }
  0x13   :  { %s1449_s28 = smov 0   ;;  %s1451_s29 = smov 0  }
  0x14   :  { %s1453_s30 = smov 0   ;;  %s1455_s8 = smov 0  }
  0x15   :  { %s1457_s9 = smov 0   ;;  %s1459_s10 = smov 0  }
  0x16   :  { %s1461_s11 = smov 0  }
  0x17 LB: > { %1805 = sst [smem:[#allocation21_spill]] %s1366_s27  ;;  %s1497_s12 = sadd.s32 4294967295, %s1394_s11   ;;  %s1394_s11 = sphi %s1461_s11, %s31_s11   ;;  %s1390_s10 = sphi %s1459_s10, %s1851_s10   ;;  %s1386_s9 = sphi %s1457_s9, %s1842_s9   ;;  %s1382_s8 = sphi %s1455_s8, %s1850_s8   ;;  %s1378_s30 = sphi %s1453_s30, %s1841_s30   ;;  %s1374_s29 = sphi %s1451_s29, %s1849_s29   ;;  %s1370_s28 = sphi %s1449_s28, %s1848_s28   ;;  %s1366_s27 = sphi %s1447_s27, %s1847_s27   ;;  %s1362_s26 = sphi %s1445_s26, %s1846_s26   ;;  %s1358_s25 = sphi %s1443_s25, %s1845_s25   ;;  %s1354_s24 = sphi %s1441_s24, %s1844_s24  }
  0x18   : > { %1806 = sst [smem:[#allocation22_spill]] %s1378_s30  ;;  %p858_p0 = scmp.ge.s32.totalorder %s1394_s11, 1 }
  0x19   : > { %1807 = sst [smem:[#allocation23_spill]] %s1382_s8  ;;  %p66_p1 = scmp.eq.s32.totalorder %s1497_s12, 0 }
  0x1a   : > { %1808 = sst [smem:[#allocation24_spill]] %s1386_s9  ;;  %p256_p2 = scmp.lt.s32.totalorder %s1394_s11, 5 }
  0x1b   : > { %s1809_s3 = sld [smem:[#allocation33_spill]]  ;;  %s1396_s17 = smov [#allocation8]  }
  0x1c   : > { %p1505_p3 = pnand %p858_p0, %p256_p2  ;;  %s269_s18 = sshll.u32 %s1396_s17, 4  ;;  %s270_s18 = int_to_ptr.vmem [resolvable:$true] %s269_s18 }
  0x1d   : > { %s1781_s20 = smov 128   ;;  %s1782_s21 = smov 8  }
  0x1e   : > { %p917_p4 = pneg %p1505_p3  ;;  %s1783_s22 = sadd.s32 4294967294, %s1394_s11  }
  0x1f   : > { %s40_s23 = sadd.s32 1, %s1386_s9  ;;  %s43_s13 = sadd.s32 1, %s1390_s10 }
  0x20   : > { %p1513_p5 = pnand %p917_p4, %p66_p1  ;;  %p41_p6 = scmp.ge.s32.totalorder %s40_s23, 2 }
  0x21   : > { %s267_s15 = sshll.u32 %s1809_s3, 4  ;;  %s52_s14 = sadd.s32 1, %s1374_s29  ;;  %s268_s15 = int_to_ptr.hbm [resolvable:$true] %s267_s15 }
  0x22   : > { %920 = dma.hbm_to_vmem [thread:$0]  (!%p1513_p5), %s268_s15, 512, %s270_s18, [#allocation9], %s1781_s20, %s1781_s20, %s1782_s21  }
  0x23   : > { %p59_p7 = scmp.ne.s32.totalorder %s1374_s29, %s1370_s28  ;;  %p1784_p8 = scmp.eq.s32.totalorder %s1394_s11, 0 }
  0x24   : > { %s1853_s23 = smov (%p41_p6, %s40_s23), 0  ;;  %s1855_s13 = smov (!%p41_p6, %s43_s13), %s1390_s10 }
  0x25   : > { %1812 = sst [smem:[#allocation25_spill]] %s1853_s23  ;;  %s48_s17 = ssub.s32 %s1386_s9, %s1853_s23 }
  0x26   : > { %p1536_p9 = por %p1784_p8, %p59_p7  ;;  %p45_p10 = scmp.ge.s32.totalorder %s1855_s13, 2 }
  0x27   : > { %p65_p11 = scmp.ne.s32.totalorder %s1370_s28, %s1366_s27  ;;  %p187_p12 = scmp.eq.s32.totalorder %s1497_s12, 3 }
  0x28   : > { %p193_p13 = scmp.eq.s32.totalorder %s1783_s22, 3  ;;  %s1857_s13 = smov (%p45_p10, %s1855_s13), 0 }
  0x29   : > { %1814 = sst [smem:[#allocation26_spill]] %s1857_s13  ;;  %p1549_p0 = por %p66_p1, %p65_p11 }
  0x2a   : > { %p1553_p2 = por %p187_p12, %p59_p7  ;;  %s1559_s21 = ssub.s32 %s1390_s10, %s1857_s13 }
  0x2b   : > { %s1815_s18 = scalar_select %p1549_p0, 1, 0 }
  0x2c   : > { %s1817_s20 = scalar_select %p1553_p2, 1, 0 }
  0x2d   : > { %1816 = sst [smem:[#allocation27_spill]] %s1815_s18  ;;  %p1561_p4 = por %p193_p13, %p65_p11 }
  0x2e   : > { %1818 = sst [smem:[#allocation28_spill]] %s1817_s20  ;;  %s49_s3 = sor.u32 %s48_s17, %s1559_s21 }
  0x2f   : > { %s1819_s22 = scalar_select %p1561_p4, 1, 0 }
  0x30   : > { %p104_p6 = scmp.eq.s32.totalorder %s1559_s21, 0  ;;  %p50_p10 = scmp.eq.s32.totalorder %s49_s3, 0 }
  0x31   : > { %1820 = sst [smem:[#allocation29_spill]] %s1819_s22  ;;  %p946_p8 = scmp.lt.s32.totalorder %s1394_s11, 4 }
  0x32   : > { %s297_s23 = sand.u32 1, %s1374_s29   ;;  %s863_s27 = sshll.u32 %s1390_s10, 1 }
  0x33   : > { %s1571_s7 = scalar_select %p50_p10, %s1374_s29, %s52_s14  }
  0x34   : > { %s862_s5 = sshll.u32 %s297_s23, 3  ;;  %s305_s6 = sadd.s32 %s1386_s9, %s863_s27 }
  0x35   : > { %s864_s30 = sshll.u32 %s305_s6, 3  ;;  %p1578_p7 = pnand %p946_p8, %p1536_p9 }
  0x36   : > { %s318_s22 = sand.u32 1, %s1394_s11   ;;  %s1822_s1 = sld [smem:[#allocation31_spill]] }
  0x37   : > { %s322_s8 = scalar_lea.vmem [#allocation5], %s862_s5  ;;  %s1823_s4 = sld [smem:[#allocation34_spill]] }
  0x38   : > { %s332_s18 = sshll.u32 %s322_s8, 4  ;;  %s1589_s9 = scalar_lea.sflag [#allocation6], %s318_s22  ;;  %s333_s18 = int_to_ptr.vmem [resolvable:$true] %s332_s18 }
  0x39   : > { %s1399_s8 = smov [#allocation10]   ;;  %s1824_s17 = smov 8  }
  0x3a   : > { %s283_s20 = sshll.u32 %s1399_s8, 4  ;;  %s1826_s0 = sld [smem:[#allocation30_spill]]  ;;  %s284_s20 = int_to_ptr.vmem [resolvable:$true] %s283_s20 }
  0x3b   : > { %s298_s8 = scalar_lea.sflag [#allocation3], %s297_s23  ;;  %s106_s19 = sadd.s32 1, %s1362_s26 }
  0x3c   : > { %s328_s3 = scalar_lea.hbm %s1822_s1, %s864_s30  ;;  %p119_p9 = scmp.ne.s32.totalorder %s1358_s25, %s1354_s24 }
  0x3d   : > { %s330_s14 = sshll.u32 %s328_s3, 4  ;;  %s281_s15 = sshll.u32 %s1823_s4, 4  ;;  %s331_s14 = int_to_ptr.hbm [resolvable:$true] %s330_s14  ;;  %s282_s15 = int_to_ptr.hbm [resolvable:$true] %s281_s15 }
  0x3e   : > { %930 = dma.hbm_to_vmem [thread:$0]  (!%p1578_p7), %s331_s14, 128, %s333_s18, %s1589_s9  }
  0x3f   : > { %s1825_s3 = smov 128   ;;  %s301_s14 = scalar_lea.vmem [#allocation2], %s862_s5 }
  0x40   : > { %923 = dma.hbm_to_vmem [thread:$0]  (!%p1513_p5), %s282_s15, 512, %s284_s20, [#allocation9], %s1825_s3, %s1825_s3, %s1824_s17  }
  0x41   : > { %s307_s18 = scalar_lea.hbm %s1826_s0, %s864_s30  ;;  %s311_s6 = sshll.u32 %s301_s14, 4  ;;  %s312_s6 = int_to_ptr.vmem [resolvable:$true] %s311_s6 }
  0x42   : > { %s309_s1 = sshll.u32 %s307_s18, 4  ;;  %p113_p5 = scmp.ne.s32.totalorder %s1362_s26, %s1358_s25  ;;  %s310_s1 = int_to_ptr.hbm [resolvable:$true] %s309_s1 }
  0x43   : > { %927 = dma.hbm_to_vmem [thread:$0]  (!%p1578_p7), %s310_s1, 128, %s312_s6, %s298_s8  }
  0x44   : > { %s1608_s4 = scalar_select %p104_p6, %s1362_s26, %s106_s19  }
  0x45   : > { %s341_s15 = sand.u32 1, %s1362_s26   ;;  %s1827_s2 = sld [smem:[#allocation32_spill]] }
  0x46   : > { %p1828_p11 = scmp.eq.s32.totalorder %s1394_s11, 0  ;;  %p1623_p13 = por %p119_p9, %p66_p1 }
  0x47   : > { %s342_s1 = scalar_lea.vmem [#allocation7], %s341_s15  ;;  %s1633_s13 = sand.u32 (!%p1505_p3), 1, %s1370_s28  }
  0x48   : > { %p115_p12 = por %p113_p5, %p1828_p11  ;;  %s349_s21 = sshll.u32 %s342_s1, 4  ;;  %s350_s21 = int_to_ptr.vmem [resolvable:$true] %s349_s21 }
  0x49   : > { %358 = sbr.rel (%p1505_p3) target bundleno = 494 (0x1ee), region = 40  ;;  %s1636_s3 = sshll.u32 (!%p1505_p3), %s1633_s13, 3 }
  0x4a   : > { %p931_p6 = pnand %p946_p8, %p115_p12  ;;  %s361_s22 = scalar_lea.sflag (!%p1505_p3), [#allocation3], %s1633_s13 }
  0x4b   : > { %s345_s5 = scalar_lea.hbm %s1827_s2, %s1390_s10  ;;  %s364_s27 = scalar_lea.vmem (!%p1505_p3), [#allocation2], %s1636_s3 }
  0x4c   : > { %s347_s23 = sshll.u32 %s345_s5, 4  ;;  %s348_s23 = int_to_ptr.hbm [resolvable:$true] %s347_s23 }
  0x4d   : > { %933 = dma.hbm_to_vmem [thread:$0]  (!%p931_p6), %s348_s23, 16, %s350_s21, %s1589_s9  }
  0x4e   : > { %1329 = dma.done.wait (%p1549_p0), %s361_s22, 128  }
  0x4f   : > { %1331 = vsyncadd (%p1549_p0), %s361_s22, 4294967168  ;;  %s370_s9 = sand.u32 1, %s1497_s12   ;;  %s374_s18 = scalar_lea.vmem [#allocation5], %s1636_s3 }
  0x50   : > { %s371_s16 = scalar_lea.sflag [#allocation6], %s370_s9 }
  0x51   : > { %1333 = dma.done.wait (%p1549_p0), %s371_s16, 128  }
  0x52   : > { %1335 = vsyncadd (%p1549_p0), %s371_s16, 4294967168  ;;  %s382_s14 = sand.u32 1, %s1358_s25  }
  0x53   : > { %s383_s6 = scalar_lea.vmem [#allocation7], %s382_s14 }
  0x54   : > { %1337 = dma.done.wait (%p1623_p13), %s371_s16, 16  }
  0x55   : > { %1339 = vsyncadd (%p1623_p13), %s371_s16, 4294967280 }
  0x56   : > { %1341 = dma.done.wait (%p66_p1), [#allocation9], 1024  }
  0x57   : > { %1343 = vsyncadd (%p66_p1), [#allocation9], 4294966272  ;;  %vm445_vm0 = vcmask 261120   ;;  %v444_v0 = vld [vmem:[%s364_s27] sm:$0xff]  ;;  %v515_v1 = vld [vmem:[%s374_s18] sm:$0xff]  ;;  %v1400_v6 = vmov 32.0  }
  0x58   : > { %v446_v2 = vsel %vm445_vm0, %v444_v0, 0.0  ;;  %v1043_v3 = vld [vmem:[%s383_s6] ss:$0 sm:$0xff]  ;;  %1044 = vrcp.f32 %v1400_v6  ;;  %v477_v24 = vld [vmem:[#allocation8 + $0x10] sm:$0xff]  ;;  %v476_v25 = vld [vmem:[#allocation8 + $0x8] sm:$0xff]  ;;  %s1831_s8 = sld [smem:[#allocation23_spill]] }
  0x59   : > { %447 = vadd.xlane.f32.xlu0 %v446_v2  ;;  %v520_v4 = vsub.f32 %v515_v1, %v1043_v3  ;;  %v478_v23 = vld [vmem:[#allocation8 + $0x18] sm:$0xff]  ;;  %v475_v27 = vld [vmem:[#allocation8] sm:$0xff]  ;;  %v546_v28 = vld [vmem:[#allocation10 + $0x10] sm:$0xff]  ;;  %s1832_s19 = sld [smem:[#allocation22_spill]]  ;;  %s436_s24 = scalar_lea.vmem [#allocation12], %s1636_s3 }
  0x5a   : > { %876 = vmatpush.xpose.msk.msra.mxu0 %vm445_vm0, %v478_v23  ;;  %v547_v26 = vld [vmem:[#allocation10 + $0x18] sm:$0xff]  ;;  %v545_v29 = vld [vmem:[#allocation10 + $0x8] sm:$0xff]  ;;  %v544_v30 = vld [vmem:[#allocation10] sm:$0xff]  ;;  %s1833_s23 = sld [smem:[#allocation36_spill]]  ;;  %s625_s22 = sshll.u32 %s436_s24, 4  ;;  %s626_s22 = int_to_ptr.vmem [resolvable:$true] %s625_s22 }
  0x5b   : > { %v521_v5 = vsel %vm445_vm0, %v520_v4, 0.0  ;;  %881 = vmatpush.xpose.msk.msra.mxu1 %vm445_vm0, %v547_v26  ;;  %s1687_s16 = scalar_lea.sflag [#allocation13], %s370_s9 }
  0x5e   : > { %v1045_v7 = vpop.eup %1044  ;;  %877 = vmatpush.xpose.msk.msra.mxu0 %vm445_vm0, %v477_v24  ;;  %s889_s15 = sshll.u32 %s1831_s8, 1 }
  0x5f   : > { %v450_v8 = vmul.f32 32.0, %v1045_v7  ;;  %vm454_vm1 = vweird.f32 %v1045_v7  ;;  %882 = vmatpush.xpose.msk.msra.mxu1 %vm445_vm0, %v546_v28  ;;  %s605_s20 = sadd.s32 %s1832_s19, %s889_s15 }
  0x60   : > { %s1676_s17 = sshll.u32 %s605_s20, 3  ;;  %s1220_s19 = scalar_lea.hbm %s1833_s23, 32 }
  0x61   : > { %522 = vadd.xlane.f32.xlu0 %v521_v5  ;;  %v451_v9 = vsub.f32 1.0, %v450_v8  ;;  %s623_s1 = scalar_lea.hbm %s1833_s23, %s1676_s17 }
  0x62   : > { %878 = vmatpush.xpose.msk.msra.mxu0 %vm445_vm0, %v476_v25  ;;  %s627_s27 = sshll.u32 %s623_s1, 4  ;;  %s628_s27 = int_to_ptr.hbm [resolvable:$true] %s627_s27 }
  0x63   : > { %v452_v10 = vmul.f32 %v1045_v7, %v451_v9  ;;  %883 = vmatpush.xpose.msk.msra.mxu1 %vm445_vm0, %v545_v29  ;;  %s1214_s18 = sshra.s32 %s628_s27, 4  ;;  %s1215_s18 = int_to_ptr.hbm [resolvable:$true] %s1214_s18 }
  0x64   : > { %s1216_s14 = scalar_lea.hbm %s1215_s18, 8  ;;  %p1221_p0 = scmp.lt.s32.totalorder %s1215_s18, %s1833_s23 }
  0x65   : > { %v453_v11 = vadd.f32 %v1045_v7, %v452_v10  ;;  %p1217_p1 = scmp.ne.s32.totalorder %s1215_s18, %s1216_s14  ;;  %p1222_p10 = scmp.lt.s32.totalorder %s1220_s19, %s1216_s14 }
  0x66   : > { %879 = vmatpush.xpose.msk.msra.mxu0 %vm445_vm0, %v475_v27 }
  0x67   : > { %v455_v12 = vsel %vm454_vm1, %v1045_v7, %v453_v11  ;;  %884 = vmatpush.xpose.msk.msra.mxu1 %vm445_vm0, %v544_v30  ;;  %p1218_p3 = pnand %p1217_p1, %p1553_p2  ;;  %p1223_p7 = por %p1222_p10, %p1221_p0 }
  0x69   : > { %p1219_p8 = pneg %p1218_p3 }
  0x6b   : > { %p1224_p5 = pnand %p1223_p7, %p1219_p8 }
  0xcc   : > { %v448_v13 = vpop.xlane.xlu0 %447 }
  0xcd   : > { %v456_v14 = vmul.f32 %v455_v12, %v448_v13 }
  0xcf   : > { %v457_v15 = vsub.f32 %v444_v0, %v456_v14 }
  0xd1   : > { %v458_v16 = vmul.f32 %v457_v15, %v457_v15 }
  0xd3   : > { %v459_v17 = vsel %vm445_vm0, %v458_v16, 0.0 }
  0xd4   : > { %460 = vadd.xlane.f32.xlu1 %v459_v17  ;;  %v523_v18 = vpop.xlane.xlu0 %522 }
  0xd5   : > { %v524_v19 = vmul.f32 %v523_v18, %v455_v12 }
  0xd7   : > { %v525_v20 = vsub.f32 %v520_v4, %v524_v19 }
  0xd9   : > { %v526_v21 = vmul.f32 %v525_v20, %v525_v20 }
  0xdb   : > { %v527_v22 = vsel %vm445_vm0, %v526_v21, 0.0 }
  0xdc   : > { %528 = vadd.xlane.f32.xlu1 %v527_v22 }
 0x147   : > { %v461_v31 = vpop.xlane.xlu1 %460 }
 0x148   : > { %v462_v32 = vmul.f32 %v461_v31, %v455_v12 }
 0x14a   : > { %v463_v33 = vadd.f32 1e-05, %v462_v32 }
 0x14c   : > { %1046 = vrsqrt.f32 %v463_v33  ;;  %vm470_vm3 = vweird.f32 %v463_v33 }
 0x14f   : > { %v529_v34 = vpop.xlane.xlu1 %528 }
 0x150   : > { %v530_v35 = vmul.f32 %v529_v34, %v455_v12 }
 0x152   : > { %v1047_v36 = vpop.eup %1046  ;;  %v531_v37 = vadd.f32 1e-05, %v530_v35 }
 0x153   : > { %v465_v38 = vmul.f32 %v1047_v36, %v463_v33  ;;  %vm471_vm2 = vweird.f32 %v1047_v36 }
 0x154   : > { %1048 = vrsqrt.f32 %v531_v37  ;;  %vm472_vm4 = vmor %vm470_vm3, %vm471_vm2  ;;  %vm538_vm6 = vweird.f32 %v531_v37 }
 0x155   : > { %v466_v39 = vmul.f32 %v1047_v36, %v465_v38 }
 0x157   : > { %v467_v40 = vmul.f32 0.5, %v466_v39 }
 0x159   : > { %v468_v41 = vsub.f32 1.5, %v467_v40 }
 0x15a   : > { %v1049_v42 = vpop.eup %1048 }
 0x15b   : > { %v533_v43 = vmul.f32 %v1049_v42, %v531_v37  ;;  %v469_v44 = vmul.f32 %v1047_v36, %v468_v41  ;;  %vm539_vm5 = vweird.f32 %v1049_v42 }
 0x15c   : > { %vm540_vm7 = vmor %vm538_vm6, %vm539_vm5 }
 0x15d   : > { %v534_v45 = vmul.f32 %v1049_v42, %v533_v43  ;;  %v473_v46 = vsel %vm472_vm4, %v1047_v36, %v469_v44 }
 0x15e   : > { %v474_v47 = vmul.f32 %v473_v46, %v457_v15 }
 0x15f   : > { %v535_v48 = vmul.f32 0.5, %v534_v45 }
 0x160   : > { %880 = vmatmul.msk.f32.vlgmr.msra.gmra.mxu0 %vm445_vm0, %v474_v47 }
 0x161   : > { %v536_v49 = vsub.f32 1.5, %v535_v48 }
 0x163   : > { %v537_v50 = vmul.f32 %v1049_v42, %v536_v49 }
 0x165   : > { %v541_v51 = vsel %vm540_vm7, %v1049_v42, %v537_v50 }
 0x166   : > { %v542_v52 = vmul.f32 %v541_v51, %v525_v20 }
 0x168   : > { %885 = vmatmul.msk.f32.vlgmr.msra.gmra.mxu1 %vm445_vm0, %v542_v52  ;;  %543 = vst.msk [vmem:[%s436_s24] sm:$0xff] %vm445_vm0, %v542_v52 }
 0x169   : > { %1227 = shalt.err (!%p1224_p5)
}
 0x16a   : > { %912 = dma.vmem_to_hbm [thread:$0]  (%p1553_p2), %s626_s22, 128, %s628_s27, %s1687_s16  }
 0x16b   : > { %s1835_s5 = sld [smem:[#allocation35_spill]]  ;;  %s429_s1 = scalar_lea.vmem [#allocation11], %s1636_s3 }
 0x16c   : > { %s609_s24 = sshll.u32 %s429_s1, 4  ;;  %s1836_s8 = sld [smem:[#allocation37_spill]]  ;;  %s610_s24 = int_to_ptr.vmem [resolvable:$true] %s609_s24 }
 0x16d   : > { %s585_s20 = scalar_lea.sflag [#allocation4], %s1633_s13 }
 0x171   : > { %s607_s30 = scalar_lea.hbm %s1835_s5, %s1676_s17  ;;  %s1248_s9 = scalar_lea.hbm %s1835_s5, 32 }
 0x172   : > { %s611_s18 = sshll.u32 %s607_s30, 4  ;;  %s1837_s19 = smov %s1836_s8  ;;  %s612_s18 = int_to_ptr.hbm [resolvable:$true] %s611_s18 }
 0x173   : > { %s639_s15 = scalar_lea.hbm %s1836_s8, %s1676_s17  ;;  %s1242_s0 = sshra.s32 %s612_s18, 4  ;;  %s1243_s0 = int_to_ptr.hbm [resolvable:$true] %s1242_s0 }
 0x174   : > { %s1244_s22 = scalar_lea.hbm %s1243_s0, 8  ;;  %p1249_p13 = scmp.lt.s32.totalorder %s1243_s0, %s1835_s5 }
 0x175   : > { %p1245_p9 = scmp.ne.s32.totalorder %s1243_s0, %s1244_s22  ;;  %p1250_p6 = scmp.lt.s32.totalorder %s1248_s9, %s1244_s22 }
 0x177   : > { %p1246_p11 = pnand %p1245_p9, %p1553_p2  ;;  %p1251_p1 = por %p1250_p6, %p1249_p13 }
 0x179   : > { %p1247_p12 = pneg %p1246_p11 }
 0x17b   : > { %p1252_p3 = pnand %p1251_p1, %p1247_p12 }
 0x1dd   : > { %v511_v53 = vpop.f32.mrf.mxu0 }
 0x1de   : > { %514 = vst.msk [vmem:[%s429_s1] sm:$0xff] %vm445_vm0, %v511_v53 }
 0x1df   : > { %1255 = shalt.err (!%p1252_p3)
}
 0x1e0   : > { %911 = dma.vmem_to_hbm [thread:$0]  (%p1553_p2), %s610_s24, 128, %s612_s18, %s585_s20  }
 0x1e1   : > { %s443_s13 = scalar_lea.vmem [#allocation14], %s1636_s3  ;;  %s643_s1 = sshll.u32 %s639_s15, 4  ;;  %s644_s1 = int_to_ptr.hbm [resolvable:$true] %s643_s1 }
 0x1e2   : > { %s641_s17 = sshll.u32 %s443_s13, 4  ;;  %s1270_s14 = sshra.s32 %s644_s1, 4  ;;  %s642_s17 = int_to_ptr.vmem [resolvable:$true] %s641_s17  ;;  %s1271_s14 = int_to_ptr.hbm [resolvable:$true] %s1270_s14 }
 0x1e3   : > { %s1272_s0 = scalar_lea.hbm %s1271_s14, 8  ;;  %s1276_s8 = scalar_lea.hbm %s1837_s19, 32 }
 0x1e4   : > { %p1273_p8 = scmp.ne.s32.totalorder %s1271_s14, %s1272_s0  ;;  %p1277_p7 = scmp.lt.s32.totalorder %s1271_s14, %s1837_s19 }
 0x1e5   : > { %v580_v54 = vpop.f32.mrf.mxu1  ;;  %p1278_p5 = scmp.lt.s32.totalorder %s1276_s8, %s1272_s0 }
 0x1e6   : > { %583 = vst.msk [vmem:[%s443_s13] sm:$0xff] %vm445_vm0, %v580_v54  ;;  %p1274_p0 = pnand %p1273_p8, %p1553_p2 }
 0x1e7   : > { %p1279_p9 = por %p1278_p5, %p1277_p7 }
 0x1e8   : > { %p1275_p10 = pneg %p1274_p0 }
 0x1ea   : > { %p1280_p11 = pnand %p1279_p9, %p1275_p10 }
 0x1ec   : > { %1283 = shalt.err (!%p1280_p11)
}
 0x1ed   : > { %913 = dma.vmem_to_hbm [thread:$0]  (%p1553_p2), %s642_s17, 128, %s644_s1, %s1687_s16  }
 0x1ee PF: > { %s1838_s18 = sld [smem:[#allocation21_spill]]  ;;  %p949_p12 = scmp.ge.s32.totalorder %s1394_s11, 2 }
 0x1f0   : > { %p935_p13 = pnand %p949_p12, %p1561_p4 }
 0x1f2   : > { %p936_p6 = pneg %p935_p13 }
 0x1f4   : > { %s655_s20 = sand.u32 1, %s1838_s18  }
 0x1f5   : > { %s656_s22 = scalar_lea.sflag [#allocation4], %s655_s20 }
 0x1f6   : > { %1345 = dma.done.wait (%p936_p6), %s656_s22, 128  }
 0x1f7   : > { %1347 = vsyncadd (%p936_p6), %s656_s22, 4294967168  ;;  %s1840_s27 = sadd.s32 4294967294, %s1394_s11  }
 0x1f8   : > { %s665_s12 = sand.u32 1, %s1840_s27  }
 0x1f9   : > { %s666_s9 = scalar_lea.sflag [#allocation13], %s665_s12 }
 0x1fa   : > { %1349 = dma.done.wait (%p936_p6), %s666_s9, 256  }
 0x1fb   : > { %1351 = vsyncadd (%p936_p6), %s666_s9, 4294967040  ;;  %s31_s11 = sadd.s32 1, %s1394_s11   ;;  %s1841_s30 = sld [smem:[#allocation24_spill]] }
 0x1fc   : > { %p28_p2 = scmp.ge.s32.totalorder %s31_s11, 6   ;;  %s1842_s9 = sld [smem:[#allocation25_spill]] }
 0x1fd   : > { %s1843_s21 = sld [smem:[#allocation26_spill]]  ;;  %s1844_s24 = smov %s1358_s25 }
 0x1fe   : > { %s1845_s25 = smov %s1362_s26  ;;  %s1846_s26 = smov %s1608_s4 }
 0x1ff   : > { %s1847_s27 = smov %s1370_s28  ;;  %s1848_s28 = smov %s1374_s29 }
 0x200   : > { %s1849_s29 = smov %s1571_s7  ;;  %s1850_s8 = smov %s1390_s10 }
 0x201   :  { %30 = sbr.rel (!%p28_p2) target bundleno = 23 (0x17), region = 149 }
 0x203   : > { %s1851_s10 = smov %s1843_s21 }
 0x206   :  { %682 = vsyncpa [#allocation3], 1 }
 0x207   :  { %684 = vsyncpa [#allocation3 + $0x1], 1 }
 0x208   :  { %685 = vsyncpa [#allocation6], 1 }
 0x209   :  { %687 = vsyncpa [#allocation6 + $0x1], 1 }
 0x20a   :  { %688 = vsyncpa [#allocation9], 1 }
 0x20b   :  { %689 = vsyncpa [#allocation4], 1 }
 0x20c   :  { %691 = vsyncpa [#allocation4 + $0x1], 1 }
 0x20d   :  { %692 = vsyncpa [#allocation13], 1 }
 0x20e   :  { %694 = vsyncpa [#allocation13 + $0x1], 1 }

</bundles_post_ra>
